<compile_context>
chip_gen: v7x
topology: tpu7x:2x2x1
jax: 0.10.0
libtpu: 0.0.40
codegen_flags: <defaults>
</compile_context>

<pallas_src>
import functools

import jax
import jax.numpy as jnp
from jax.experimental import pallas as pl
from jax.experimental.pallas import tpu as pltpu


def _round_up(v, m):
    return (v + m - 1) // m * m


def _fused_kernel(x_ref, w_ref, b_ref, o_ref, xp_ref, stk_ref, *, ks, pad, L):
    """One (batch, channel-tile) block.

    x_ref  : (L, TC)             input series (time on sublanes, channels on lanes)
    w_ref  : (Pp, (S+1)*L) bf16  [W_sum | dW_1 | ... | dW_S], dW_j = Wt_j - Ws_j
    b_ref  : (Pp, 1)  f32        sum over scales of (seasonal bias + trend bias)
    o_ref  : (Pp, TC)            output block
    xp_ref : (L + 2*pad, TC) f32 zero-padded series scratch (AvgPool1d zero pad)
    stk_ref: ((S+1)*L, TC)  f32  stacked MXU operand [x ; trend_1 ; ... ; trend_S]
    """
    xf = x_ref[...].astype(jnp.float32)                    # (L, TC)
    stk_ref[pl.ds(0, L), :] = xf                           # row-block 0 = x

    if pad > 0:
        xp_ref[...] = jnp.zeros_like(xp_ref)               # zero borders (and center)
        xp_ref[pl.ds(pad, L), :] = xf                      # centre tap == x

    # Incremental shared window sums across sorted kernel sizes: total taps =
    # max(k) instead of sum(k).  All elementwise math stays in f32 (VPU).
    acc = xf
    h_prev = 0
    for j, k in enumerate(ks):                             # ks sorted ascending, odd
        h = (k - 1) // 2
        for d in range(h_prev + 1, h + 1):
            acc = (acc
                   + xp_ref[pl.ds(pad - d, L), :]
                   + xp_ref[pl.ds(pad + d, L), :])
        h_prev = h
        # AvgPool1d(count_include_pad=True): denominator is always k.
        stk_ref[pl.ds((j + 1) * L, L), :] = acc * (1.0 / float(k))

    # Single stacked matmul: (Pp, (S+1)L) x ((S+1)L, TC), bf16 x bf16 -> f32 acc.
    out = jnp.dot(w_ref[...], stk_ref[...].astype(jnp.bfloat16),
                  preferred_element_type=jnp.float32)
    o_ref[...] = (out + b_ref[...]).astype(o_ref.dtype)


def mixed_linear_forward(x, w_seasonal, w_trend, b_seasonal, b_trend,
                         decomp_kernel_sizes):
    """Model.forward (individual=False).

    x          : (B, L, C)  batch, seq_len, channels
    w_seasonal : (S, P, L)  per-scale Linear_Seasonal weights (out, in)
    w_trend    : (S, P, L)  per-scale Linear_Trend weights
    b_seasonal : (S, P)
    b_trend    : (S, P)
    returns    : (B, P, C)
    """
    B, L, C = x.shape
    S, P, L_w = w_seasonal.shape
    assert L_w == L and w_trend.shape == (S, P, L)
    assert b_seasonal.shape == (S, P) and b_trend.shape == (S, P)
    assert len(decomp_kernel_sizes) == S

    # Sort scales ascending so the window sum can be grown incrementally
    # (contributions are summed, so order is free).
    order = sorted(range(S), key=lambda j: int(decomp_kernel_sizes[j]))
    ks = tuple(int(decomp_kernel_sizes[j]) for j in order)
    assert all(k % 2 == 1 for k in ks), "kernel sizes must be odd"

    pad = (max(ks) - 1) // 2
    Lp = L + 2 * pad
    SL = (S + 1) * L
    P_pad = _round_up(P, 8)            # unmasked sublane stores on the output tile

    # ---- algebraic head fusion + K-stacking weight prep -------------------
    #   out = (sum_j Ws_j) @ x + sum_j (Wt_j - Ws_j) @ trend_j
    idx = jnp.asarray(order, dtype=jnp.int32)
    w_sum = jnp.sum(w_seasonal, axis=0)                          # (P, L)
    dw = (w_trend - w_seasonal)[idx]                             # (S, P, L) sorted
    wcat = jnp.concatenate([w_sum[:, None, :], jnp.transpose(dw, (1, 0, 2))],
                           axis=1).reshape(P, SL)
    if P_pad != P:
        wcat = jnp.pad(wcat, ((0, P_pad - P), (0, 0)))
    wcat = wcat.astype(jnp.bfloat16)                             # bf16 MXU operand

    bias = (jnp.sum(b_seasonal, axis=0)
            + jnp.sum(b_trend, axis=0)).astype(jnp.float32)      # keep f32
    if P_pad != P:
        bias = jnp.pad(bias, (0, P_pad - P))
    bias = bias.reshape(P_pad, 1)

    # ---- per-chip VMEM budget & channel-tile (lane) sizing ----------------
    try:
        vmem_cap = int(pltpu.get_tpu_info().vmem_capacity_bytes)
    except Exception:
        vmem_cap = 64 * 2 ** 20        # conservative fallback, valid on v5e/v6e/v7x
    budget = int(0.70 * vmem_cap)

    def vmem_bytes(tc):
        lanes = _round_up(max(tc, 1), 128)
        sub = lambda r: _round_up(max(r, 1), 8)
        b = 2 * sub(L) * lanes * 4                                # x block (dbl-buf)
        b += 2 * _round_up(P_pad, 16) * _round_up(SL, 128) * 2    # bf16 weights (dbl)
        b += 2 * 8 * 128 * 4                                      # bias tile (dbl)
        b += 2 * sub(P_pad) * lanes * 4                           # out block (dbl)
        b += sub(Lp) * lanes * 4 + sub(SL) * lanes * 4            # xp / stacked scratch
        b += (3 * sub(L) + sub(P_pad)) * lanes * 4 + sub(SL) * lanes * 2  # live temps
        return b

    # Guarantee >=2 grid steps (v7x has 2 TensorCores); B usually provides it.
    min_c_tiles = 1 if B >= 2 else (2 if C >= 256 else 1)
    TC = C
    if min_c_tiles > 1 or vmem_bytes(TC) > budget:
        TC = _round_up(-(-C // min_c_tiles), 128)
        while TC > 128 and vmem_bytes(TC) > budget:
            TC -= 128
        TC = max(TC, 128)
    C_pad = _round_up(C, TC)
    if C_pad != C:
        # Only hit when channel tiling is needed: pad so every block is full.
        x = jnp.pad(x, ((0, 0), (0, 0), (0, C_pad - C)))

    needed = vmem_bytes(TC)
    vmem_limit = int(min(max(2 * needed, 32 * 2 ** 20), int(0.9 * vmem_cap)))

    flops = 2 * B * C_pad * P_pad * SL + 2 * B * C_pad * L * (pad + S)
    bytes_accessed = (x.size * x.dtype.itemsize + wcat.size * 2 + bias.size * 4
                      + B * P_pad * C_pad * x.dtype.itemsize)

    kernel = functools.partial(_fused_kernel, ks=ks, pad=pad, L=L)
    grid = (B, C_pad // TC)

    out = pl.pallas_call(
        kernel,
        out_shape=jax.ShapeDtypeStruct((B, P_pad, C_pad), x.dtype),
        grid_spec=pltpu.PrefetchScalarGridSpec(
            num_scalar_prefetch=0,
            grid=grid,
            in_specs=[
                pl.BlockSpec((None, L, TC), lambda b, c: (b, 0, c)),   # x tile
                pl.BlockSpec((P_pad, SL), lambda b, c: (0, 0)),        # fused weights
                pl.BlockSpec((P_pad, 1), lambda b, c: (0, 0)),         # folded bias
            ],
            out_specs=pl.BlockSpec((None, P_pad, TC), lambda b, c: (b, 0, c)),
            scratch_shapes=[
                pltpu.VMEM((Lp, TC), jnp.float32),    # zero-padded series
                pltpu.VMEM((SL, TC), jnp.float32),    # stacked [x ; trend_j ...]
            ],
        ),
        compiler_params=pltpu.CompilerParams(
            dimension_semantics=("parallel", "parallel"),
            vmem_limit_bytes=vmem_limit,
        ),
        cost_estimate=pl.CostEstimate(flops=int(flops), transcendentals=0,
                                      bytes_accessed=int(bytes_accessed)),
    )(x, wcat, bias)

    return out[:, :P, :C]                                          # (B, P, C)


def _reference_forward(x, w_seasonal, w_trend, b_seasonal, b_trend, ks):
    """Pure-JAX reference mirroring the PyTorch Model.forward (individual=False)."""
    B, L, C = x.shape
    hi = jax.lax.Precision.HIGHEST
    out = jnp.zeros((B, w_seasonal.shape[1], C), jnp.float32)
    for j, k in enumerate(ks):
        pad = (k - 1) // 2
        xp = jnp.pad(x, ((0, 0), (pad, pad), (0, 0)))
        trend = sum(xp[:, i:i + L, :] for i in range(k)) / float(k)
        seasonal = x - trend
        out = out + jnp.einsum("blc,pl->bpc", seasonal, w_seasonal[j], precision=hi)
        out = out + jnp.einsum("blc,pl->bpc", trend, w_trend[j], precision=hi)
        out = out + b_seasonal[j][None, :, None] + b_trend[j][None, :, None]
    return out


if __name__ == "__main__":
    def run_case(B, L, C, P, ks):
        key = jax.random.PRNGKey(0)
        k0, k1, k2, k3, k4 = jax.random.split(key, 5)
        S = len(ks)
        x = jax.random.normal(k0, (B, L, C), jnp.float32)
        ws = 0.1 * jax.random.normal(k1, (S, P, L), jnp.float32)
        wt = 0.1 * jax.random.normal(k2, (S, P, L), jnp.float32)
        bs = 0.1 * jax.random.normal(k3, (S, P), jnp.float32)
        bt = 0.1 * jax.random.normal(k4, (S, P), jnp.float32)

        out = jax.block_until_ready(
            mixed_linear_forward(x, ws, wt, bs, bt, ks))
        ref = _reference_forward(x, ws, wt, bs, bt, ks)
        assert out.shape == (B, P, C), (out.shape, (B, P, C))
        err = float(jnp.max(jnp.abs(out - ref)))
        # bf16 MXU operands with f32 accumulation; structural errors would be O(1).
        assert jnp.allclose(out, ref, atol=2e-2, rtol=2e-2), f"max abs err {err}"

    # Small config matching the module's (batch, seq_len, channels) layout.
    run_case(B=2, L=16, C=8, P=8, ks=[3, 5, 7])
    # Multiple scales incl. k=1, P not a multiple of 8, wider channel count.
    run_case(B=4, L=24, C=160, P=12, ks=[1, 5, 13])
    # B=1 path: forces >=2 channel tiles (grid parallelism) + channel padding.
    run_case(B=1, L=32, C=384, P=16, ks=[3, 7])

    print("KERNEL_OK")
</pallas_src>

<mosaic_0001>
module attributes {stable_mosaic.version = 11 : i64} {
  func.func @_fused_kernel(%arg0: i32, %arg1: i32, %arg2: memref<1x16x8xf32, #tpu.memory_space<vmem>>, %arg3: memref<8x64xbf16, #tpu.memory_space<vmem>>, %arg4: memref<8x1xf32, #tpu.memory_space<vmem>>, %arg5: memref<1x8x8xf32, #tpu.memory_space<vmem>>, %arg6: memref<22x8xf32, #tpu.memory_space<vmem>>, %arg7: memref<64x8xf32, #tpu.memory_space<vmem>>) attributes {dimension_semantics = [#tpu.dimension_semantics<parallel>, #tpu.dimension_semantics<parallel>], iteration_bounds = array<i64: 2, 1>, scalar_prefetch = 0 : i64, scratch_operands = 2 : i64, tpu.core_type = #tpu.core_type<tc>, window_params = [{transform_indices = @transform_0, window_bounds = array<i64: 1, 16, 8>}, {pipeline_mode = #tpu.pipeline_mode<synchronous>, transform_indices = @transform_1, window_bounds = array<i64: 8, 64>}, {pipeline_mode = #tpu.pipeline_mode<synchronous>, transform_indices = @transform_2, window_bounds = array<i64: 8, 1>}, {transform_indices = @transform_3, window_bounds = array<i64: 1, 8, 8>}]} {
    %c0 = arith.constant 0 : index
    %c0_0 = arith.constant 0 : index
    %c0_1 = arith.constant 0 : index
    %0 = vector.load %arg2[%c0, %c0_0, %c0_1] : memref<1x16x8xf32, #tpu.memory_space<vmem>>, vector<1x16x8xf32>
    %1 = vector.shape_cast %0 : vector<1x16x8xf32> to vector<16x8xf32>
    %c0_2 = arith.constant 0 : index
    %c0_3 = arith.constant 0 : index
    %2 = vector.load %arg7[%c0_2, %c0_3] : memref<64x8xf32, #tpu.memory_space<vmem>>, vector<16x8xf32>
    tpu.vector_store %arg7[%c0_2, %c0_3], %1 {strides = array<i32>} : memref<64x8xf32, #tpu.memory_space<vmem>>, vector<16x8xf32>,
    %cst = arith.constant 0.000000e+00 : f32
    %3 = vector.broadcast %cst : f32 to vector<22x8xf32>
    %c0_4 = arith.constant 0 : index
    %c0_5 = arith.constant 0 : index
    %4 = vector.load %arg6[%c0_4, %c0_5] : memref<22x8xf32, #tpu.memory_space<vmem>>, vector<22x8xf32>
    tpu.vector_store %arg6[%c0_4, %c0_5], %3 {strides = array<i32>} : memref<22x8xf32, #tpu.memory_space<vmem>>, vector<22x8xf32>,
    %c3 = arith.constant 3 : index
    %c0_6 = arith.constant 0 : index
    %5 = vector.load %arg6[%c3, %c0_6] : memref<22x8xf32, #tpu.memory_space<vmem>>, vector<16x8xf32>
    tpu.vector_store %arg6[%c3, %c0_6], %1 {strides = array<i32>} : memref<22x8xf32, #tpu.memory_space<vmem>>, vector<16x8xf32>,
    %c2 = arith.constant 2 : index
    %c0_7 = arith.constant 0 : index
    %6 = vector.load %arg6[%c2, %c0_7] : memref<22x8xf32, #tpu.memory_space<vmem>>, vector<16x8xf32>
    %7 = arith.addf %1, %6 : vector<16x8xf32>
    %c4 = arith.constant 4 : index
    %c0_8 = arith.constant 0 : index
    %8 = vector.load %arg6[%c4, %c0_8] : memref<22x8xf32, #tpu.memory_space<vmem>>, vector<16x8xf32>
    %9 = arith.addf %7, %8 : vector<16x8xf32>
    %cst_9 = arith.constant 0.333333343 : f32
    %10 = vector.broadcast %cst_9 : f32 to vector<16x8xf32>
    %11 = arith.mulf %9, %10 : vector<16x8xf32>
    %c16 = arith.constant 16 : index
    %c0_10 = arith.constant 0 : index
    %12 = vector.load %arg7[%c16, %c0_10] : memref<64x8xf32, #tpu.memory_space<vmem>>, vector<16x8xf32>
    tpu.vector_store %arg7[%c16, %c0_10], %11 {strides = array<i32>} : memref<64x8xf32, #tpu.memory_space<vmem>>, vector<16x8xf32>,
    %c1 = arith.constant 1 : index
    %c0_11 = arith.constant 0 : index
    %13 = vector.load %arg6[%c1, %c0_11] : memref<22x8xf32, #tpu.memory_space<vmem>>, vector<16x8xf32>
    %14 = arith.addf %9, %13 : vector<16x8xf32>
    %c5 = arith.constant 5 : index
    %c0_12 = arith.constant 0 : index
    %15 = vector.load %arg6[%c5, %c0_12] : memref<22x8xf32, #tpu.memory_space<vmem>>, vector<16x8xf32>
    %16 = arith.addf %14, %15 : vector<16x8xf32>
    %cst_13 = arith.constant 2.000000e-01 : f32
    %17 = vector.broadcast %cst_13 : f32 to vector<16x8xf32>
    %18 = arith.mulf %16, %17 : vector<16x8xf32>
    %c32 = arith.constant 32 : index
    %c0_14 = arith.constant 0 : index
    %19 = vector.load %arg7[%c32, %c0_14] : memref<64x8xf32, #tpu.memory_space<vmem>>, vector<16x8xf32>
    tpu.vector_store %arg7[%c32, %c0_14], %18 {strides = array<i32>} : memref<64x8xf32, #tpu.memory_space<vmem>>, vector<16x8xf32>,
    %c0_15 = arith.constant 0 : index
    %c0_16 = arith.constant 0 : index
    %20 = vector.load %arg6[%c0_15, %c0_16] : memref<22x8xf32, #tpu.memory_space<vmem>>, vector<16x8xf32>
    %21 = arith.addf %16, %20 : vector<16x8xf32>
    %c6 = arith.constant 6 : index
    %c0_17 = arith.constant 0 : index
    %22 = vector.load %arg6[%c6, %c0_17] : memref<22x8xf32, #tpu.memory_space<vmem>>, vector<16x8xf32>
    %23 = arith.addf %21, %22 : vector<16x8xf32>
    %cst_18 = arith.constant 0.142857149 : f32
    %24 = vector.broadcast %cst_18 : f32 to vector<16x8xf32>
    %25 = arith.mulf %23, %24 : vector<16x8xf32>
    %c48 = arith.constant 48 : index
    %c0_19 = arith.constant 0 : index
    %26 = vector.load %arg7[%c48, %c0_19] : memref<64x8xf32, #tpu.memory_space<vmem>>, vector<16x8xf32>
    tpu.vector_store %arg7[%c48, %c0_19], %25 {strides = array<i32>} : memref<64x8xf32, #tpu.memory_space<vmem>>, vector<16x8xf32>,
    %c0_20 = arith.constant 0 : index
    %c0_21 = arith.constant 0 : index
    %27 = vector.load %arg3[%c0_20, %c0_21] : memref<8x64xbf16, #tpu.memory_space<vmem>>, vector<8x64xbf16>
    %c0_22 = arith.constant 0 : index
    %c0_23 = arith.constant 0 : index
    %28 = vector.load %arg7[%c0_22, %c0_23] : memref<64x8xf32, #tpu.memory_space<vmem>>, vector<64x8xf32>
    %29 = arith.truncf %28 : vector<64x8xf32> to vector<64x8xbf16>
    %cst_24 = arith.constant dense<0.000000e+00> : vector<8x8xf32>
    %30 = tpu.matmul %27, %29, %cst_24 {dimension_numbers = #tpu.dot_dimension_numbers<[1], [0], [0], [1], [0, 0, 1, 1], [], []>} : vector<8x64xbf16>, vector<64x8xbf16>, vector<8x8xf32> -> vector<8x8xf32>
    %c0_25 = arith.constant 0 : index
    %c0_26 = arith.constant 0 : index
    %31 = vector.load %arg4[%c0_25, %c0_26] : memref<8x1xf32, #tpu.memory_space<vmem>>, vector<8x1xf32>
    %32 = vector.broadcast %31 : vector<8x1xf32> to vector<8x8xf32>
    %33 = arith.addf %30, %32 : vector<8x8xf32>
    %c0_27 = arith.constant 0 : index
    %c0_28 = arith.constant 0 : index
    %c0_29 = arith.constant 0 : index
    %34 = vector.load %arg5[%c0_27, %c0_28, %c0_29] : memref<1x8x8xf32, #tpu.memory_space<vmem>>, vector<1x8x8xf32>
    %35 = vector.shape_cast %34 : vector<1x8x8xf32> to vector<8x8xf32>
    %36 = vector.shape_cast %33 : vector<8x8xf32> to vector<1x8x8xf32>
    tpu.vector_store %arg5[%c0_27, %c0_28, %c0_29], %36 {strides = array<i32>} : memref<1x8x8xf32, #tpu.memory_space<vmem>>, vector<1x8x8xf32>,
    return
  }
  func.func @transform_0(%arg0: i32, %arg1: i32) -> (i32, i32, i32) {
    %c0_i32 = arith.constant 0 : i32
    %c0_i32_0 = arith.constant 0 : i32
    return %arg0, %c0_i32, %arg1 : i32, i32, i32
  }
  func.func @transform_1(%arg0: i32, %arg1: i32) -> (i32, i32) {
    %c0_i32 = arith.constant 0 : i32
    %c0_i32_0 = arith.constant 0 : i32
    %c0_i32_1 = arith.constant 0 : i32
    return %c0_i32, %c0_i32_0 : i32, i32
  }
  func.func @transform_2(%arg0: i32, %arg1: i32) -> (i32, i32) {
    %c0_i32 = arith.constant 0 : i32
    %c0_i32_0 = arith.constant 0 : i32
    %c0_i32_1 = arith.constant 0 : i32
    return %c0_i32, %c0_i32_0 : i32, i32
  }
  func.func @transform_3(%arg0: i32, %arg1: i32) -> (i32, i32, i32) {
    %c0_i32 = arith.constant 0 : i32
    %c0_i32_0 = arith.constant 0 : i32
    return %arg0, %c0_i32, %arg1 : i32, i32, i32
  }
}

</mosaic_0001>

<bundles_post_ra>
// kernel: tpu_custom_call.1
= control target key start
LH: loop header
LB: loop body
LE: loop exit
PB: predicated region body
PF: predicated region fallthrough
CT: control target
= control target key end

     0   :  { %8 = vsyncpa [#allocation5], 0  ;;  %s728_s0 = inlined_call_operand.vmem [shape: f32[2,16,8], index: 0, kind: input, shape index: {}]   ;;  %s729_s1 = inlined_call_operand.vmem [shape: bf16[8,64], index: 1, kind: input, shape index: {}]   ;;  %s730_s2 = inlined_call_operand.vmem [shape: f32[8,1], index: 2, kind: input, shape index: {}]   ;;  %s731_s3 = inlined_call_operand.hbm [shape: f32[2,8,8], index: 3, kind: output, shape index: {}]  }
   0x1   :  { %10 = vsyncpa [#allocation5 + $0x1], 0  ;;  %s589_s12 = smov 0   ;;  %s591_s13 = smov 0  }
   0x2   :  { %s593_s14 = smov 0   ;;  %s595_s15 = smov 0  }
   0x3   :  { %s597_s16 = smov 0   ;;  %s599_s17 = smov 0  }
   0x4 LB: > { %s395_s18 = sadd.s32 4294967295, %s563_s17   ;;  %s396_s19 = sadd.s32 4294967294, %s563_s17   ;;  %s563_s17 = sphi %s599_s17, %s16_s17   ;;  %s559_s16 = sphi %s597_s16, %s738_s16   ;;  %s555_s15 = sphi %s595_s15, %s737_s15   ;;  %s551_s14 = sphi %s593_s14, %s736_s14   ;;  %s547_s13 = sphi %s591_s13, %s735_s13   ;;  %s543_s12 = sphi %s589_s12, %s734_s12  }
   0x5   : > { %s28_s20 = sadd.s32 1, %s559_s16  ;;  %s107_s21 = sadd.s32 1, %s551_s14 }
   0x6   : > { %p30_p0 = scmp.ge.s32.totalorder %s28_s20, 2  ;;  %p117_p1 = scmp.ne.s32.totalorder %s551_s14, %s547_s13 }
   0x7   : > { %p118_p2 = scmp.eq.s32.totalorder %s395_s18, 1  ;;  %p123_p3 = scmp.ne.s32.totalorder %s547_s13, %s543_s12 }
   0x8   : > { %s740_s20 = smov (%p30_p0, %s28_s20), 0  ;;  %p124_p5 = scmp.eq.s32.totalorder %s396_s19, 1 }
   0x9   : > { %p629_p4 = por %p118_p2, %p117_p1  ;;  %s102_s23 = ssub.s32 %s559_s16, %s740_s20 }
   0xa   : > { %p399_p6 = scmp.ge.s32.totalorder %s563_s17, 1  ;;  %p105_p7 = scmp.eq.s32.totalorder %s102_s23, 0 }
   0xb   : > { %p636_p8 = por %p124_p5, %p123_p3  ;;  %p159_p9 = scmp.lt.s32.totalorder %s563_s17, 3 }
   0xc   : > { %s642_s25 = scalar_select %p105_p7, %s551_s14, %s107_s21  }
   0xd   : > { %p160_p10 = pnand %p399_p6, %p159_p9 }
   0xe   : > { %p186_p11 = scmp.lt.s32.totalorder (!%p160_p10), %s555_s15, 1  ;;  %vm197_vm0 = vcmask (!%p160_p10), 64512   ;;  %vm202_vm1 = vcmask (!%p160_p10), 62464   ;;  %v255_v0 = vld [vmem:[%s730_s2] sm:$0xff] (!%p160_p10)  ;;  %v565_v1 = vmov (!%p160_p10), 0.0   ;;  %vm566_vm2 = vmmov (!%p160_p10), 0  }
   0xf   : > { %163 = sbr.rel (%p160_p10) target bundleno = 290 (0x122), region = 32  ;;  %200 = vst.msk [vmem:[#allocation2] sm:$0xff] (!%p160_p10), %vm197_vm0, %v565_v1  ;;  %201 = vst.msk [vmem:[#allocation2 + $0x8] sm:$0xff] (!%p160_p10), %vm197_vm0, %v565_v1  ;;  %414 = vmatprep.subr.bf16.mxu0 (!%p160_p10), %v565_v1  ;;  %422 = vmatprep.mubr.msk.bf16.mxu0 (!%p160_p10), %vm566_vm2, %v565_v1  ;;  %v567_v2 = vmov (!%p160_p10), 0   ;;  %v242_v47 = vld [vmem:[%s729_s1] sm:$0xf] (!%p160_p10) }
  0x10   : > { %203 = vst.msk [vmem:[#allocation2 + $0x10] sm:$0x3f] (!%p160_p10), %vm202_vm1, %v565_v1  ;;  %484 = vset.pattern.permute.xlu0 (!%p160_p10), %v567_v2  ;;  %vm261_vm3 = vcmask (!%p160_p10), 523264   ;;  %s183_s8 = sand.u32 (!%p160_p10), 1, %s547_s13   ;;  %s405_s10 = sshll.u32 (!%p160_p10), %s555_s15, 7 }
  0x11   : > { %258 = vperm.xlu0 (!%p160_p10), %484, %v255_v0   ;;  %s400_s9 = sshll.u32 (!%p160_p10), %s183_s8, 3  ;;  %s680_s23 = scalar_lea.hbm (!%p160_p10), %s731_s3, %s405_s10 }
  0x12   : > { %s185_s11 = scalar_lea.vmem (!%p160_p10), [#allocation4], %s400_s9  ;;  %s568_s27 = smov (!%p160_p10), [#allocation4]  }
  0x13   : > { %s321_s18 = sshll.u32 (!%p160_p10), %s185_s11, 4  ;;  %s682_s18 = int_to_ptr.vmem [resolvable:$true] %s321_s18 }
  0x14   : > { %s485_s26 = scalar_lea.vmem (!%p160_p10), %s682_s18, 128 }
  0x15   : > { %p486_p12 = scmp.ne.s32.totalorder (!%p160_p10), %s682_s18, %s485_s26 }
  0x16   : > { %s187_s28 = scalar_select %p186_p11, %s555_s15, 1 }
  0x17   : > { %s307_s15 = scalar_lea.sflag [#allocation5], %s183_s8  ;;  %p487_p13 = pnand %p486_p12, %p629_p4 }
  0x18   : > { %s408_s29 = sshll.u32 %s187_s28, 4  ;;  %s489_s28 = sshll.u32 %s568_s27, 4  ;;  %s490_s28 = int_to_ptr.vmem [resolvable:$false] %s489_s28 }
  0x19   : > { %s193_s5 = scalar_lea.vmem %s728_s0, %s408_s29  ;;  %p488_p0 = pneg %p487_p13 }
  0x1a   : > { %v195_v3 = vld [vmem:[%s193_s5] sm:$0xff]  ;;  %v196_v4 = vld [vmem:[%s193_s5 + $0x8] sm:$0xff]  ;;  %s491_s29 = scalar_lea.vmem %s490_s28, 256  ;;  %p492_p1 = scmp.lt.s32.totalorder %s682_s18, %s490_s28 }
  0x1b   : > { %204 = vst.msk [vmem:[#allocation2 + $0x3] sm:$0xff] %vm197_vm0, %v195_v3  ;;  %205 = vst.msk [vmem:[#allocation2 + $0xb] sm:$0xff] %vm197_vm0, %v196_v4  ;;  %p493_p2 = scmp.lt.s32.totalorder %s491_s29, %s485_s26 }
  0x1c   : > { %198 = vst.msk [vmem:[#allocation3] sm:$0xff] %vm197_vm0, %v195_v3  ;;  %199 = vst.msk [vmem:[#allocation3 + $0x8] sm:$0xff] %vm197_vm0, %v196_v4 }
  0x1d   : > { %p494_p3 = por %p493_p2, %p492_p1 }
  0x1f   : > { %p495_p5 = pnand %p494_p3, %p488_p0 }
  0x22   : > { %v206_v5 = vld [vmem:[#allocation2 + $0x2] sm:$0xff]  ;;  %v207_v6 = vld [vmem:[#allocation2 + $0xa] sm:$0xff] }
  0x23   : > { %v243_v7 = vld [vmem:[#allocation3] sm:$0xff]  ;;  %v208_v8 = vadd.f32 %v206_v5, %v195_v3  ;;  %v209_v9 = vadd.f32 %v207_v6, %v196_v4  ;;  %v244_v10 = vld [vmem:[#allocation3 + $0x8] sm:$0xff]  ;;  %v211_v12 = vld [vmem:[#allocation2 + $0xc] sm:$0xff] }
  0x24   : > { %v210_v11 = vld [vmem:[#allocation2 + $0x4] sm:$0xff]  ;;  %v251_v13 = vpack.c.bf16 %v244_v10, %v243_v7  ;;  %v223_v19 = vld [vmem:[#allocation2 + $0xd] sm:$0xff] }
  0x25   : > { %v218_v14 = vld [vmem:[#allocation2 + $0x1] sm:$0xff]  ;;  %v219_v15 = vld [vmem:[#allocation2 + $0x9] sm:$0xff]  ;;  %v212_v16 = vadd.f32 %v210_v11, %v208_v8  ;;  %v213_v17 = vadd.f32 %v211_v12, %v209_v9 }
  0x26   : > { %415 = vmatpush3.bf16.msra.mxu0 %v251_v13  ;;  %v222_v18 = vld [vmem:[#allocation2 + $0x5] sm:$0xff]  ;;  %v235_v29 = vld [vmem:[#allocation2 + $0xe] sm:$0xff] }
  0x27   : > { %416 = vmatprep.subr.bf16.mxu0 %v565_v1  ;;  %v214_v20 = vmul.f32 0.33333334, %v212_v16  ;;  %v215_v21 = vmul.f32 0.33333334, %v213_v17  ;;  %v220_v22 = vadd.f32 %v218_v14, %v212_v16  ;;  %v221_v23 = vadd.f32 %v219_v15, %v213_v17  ;;  %v230_v24 = vld [vmem:[#allocation2] sm:$0xff]  ;;  %v231_v25 = vld [vmem:[#allocation2 + $0x8] sm:$0xff] }
  0x28   : > { %v234_v28 = vld [vmem:[#allocation2 + $0x6] sm:$0xff] }
  0x29   : > { %216 = vst.msk [vmem:[#allocation3 + $0x10] sm:$0xff] %vm197_vm0, %v214_v20  ;;  %217 = vst.msk [vmem:[#allocation3 + $0x18] sm:$0xff] %vm197_vm0, %v215_v21  ;;  %v224_v26 = vadd.f32 %v222_v18, %v220_v22  ;;  %v225_v27 = vadd.f32 %v223_v19, %v221_v23 }
  0x2b   : > { %v226_v30 = vmul.f32 0.2, %v224_v26  ;;  %v227_v31 = vmul.f32 0.2, %v225_v27  ;;  %v232_v32 = vadd.f32 %v230_v24, %v224_v26  ;;  %v233_v33 = vadd.f32 %v231_v25, %v225_v27 }
  0x2d   : > { %228 = vst.msk [vmem:[#allocation3 + $0x20] sm:$0xff] %vm197_vm0, %v226_v30  ;;  %229 = vst.msk [vmem:[#allocation3 + $0x28] sm:$0xff] %vm197_vm0, %v227_v31  ;;  %v236_v34 = vadd.f32 %v234_v28, %v232_v32  ;;  %v237_v35 = vadd.f32 %v235_v29, %v233_v33 }
  0x2f   : > { %v238_v36 = vmul.f32 0.14285715, %v236_v34  ;;  %v239_v37 = vmul.f32 0.14285715, %v237_v35 }
  0x30   : > { %v245_v38 = vld [vmem:[#allocation3 + $0x10] sm:$0xff]  ;;  %v246_v39 = vld [vmem:[#allocation3 + $0x18] sm:$0xff] }
  0x31   : > { %v252_v40 = vpack.c.bf16 %v246_v39, %v245_v38  ;;  %240 = vst.msk [vmem:[#allocation3 + $0x30] sm:$0xff] %vm197_vm0, %v238_v36  ;;  %241 = vst.msk [vmem:[#allocation3 + $0x38] sm:$0xff] %vm197_vm0, %v239_v37 }
  0x33   : > { %417 = vmatpush3.bf16.msra.mxu0 %v252_v40 }
  0x34   : > { %418 = vmatprep.subr.bf16.mxu0 %v565_v1  ;;  %v247_v41 = vld [vmem:[#allocation3 + $0x20] sm:$0xff]  ;;  %v248_v42 = vld [vmem:[#allocation3 + $0x28] sm:$0xff] }
  0x35   : > { %v253_v43 = vpack.c.bf16 %v248_v42, %v247_v41 }
  0x37   : > { %419 = vmatpush3.bf16.msra.mxu0 %v253_v43 }
  0x38   : > { %420 = vmatprep.subr.bf16.mxu0 %v565_v1  ;;  %v249_v44 = vld [vmem:[#allocation3 + $0x30] sm:$0xff]  ;;  %v250_v45 = vld [vmem:[#allocation3 + $0x38] sm:$0xff] }
  0x39   : > { %v254_v46 = vpack.c.bf16 %v250_v45, %v249_v44 }
  0x3b   : > { %421 = vmatpush3.bf16.msra.mxu0 %v254_v46 }
  0x3e   : > { %423 = vmatmul.mubr.msk.bf16.vlgmr.msra.gmra.mrb[0].mxu0 %vm261_vm3, %v242_v47 }
  0x90   : > { %v259_v48 = vpop.permute.xlu0 %258 }
 0x111   : > { %v299_v49 = vpop.f32.mrb[0].mxu0 }
 0x112   : > { %v300_v50 = vadd.f32 %v299_v49, %v259_v48  ;;  %v424_v51 = vpop.f32.mrb[1].mxu0 }
 0x113   : > { %v302_v52 = vpop.f32.mrb[2].mxu0 }
 0x114   : > { %v425_v53 = vpop.f32.mrb[3].mxu0  ;;  %305 = vst.msk [vmem:[%s185_s11] sm:$0xff] %vm197_vm0, %v300_v50 }
 0x115   : > { %498 = shalt.err (!%p495_p5)
}
 0x116   : > { %s499_s30 = scalar_lea.hbm %s680_s23, 128  ;;  %s503_s6 = scalar_lea.hbm %s731_s3, 256 }
 0x117   : > { %p500_p6 = scmp.ne.s32.totalorder %s680_s23, %s499_s30  ;;  %p504_p10 = scmp.lt.u32.totalorder %s680_s23, %s731_s3 }
 0x118   : > { %p505_p11 = scmp.lt.u32.totalorder %s503_s6, %s499_s30  ;;  %p507_p13 = scmp.lt.u32.totalorder %s499_s30, %s680_s23 }
 0x119   : > { %p501_p7 = pnand %p500_p6, %p629_p4 }
 0x11a   : > { %p506_p12 = por %p505_p11, %p504_p10 }
 0x11b   : > { %p502_p9 = pneg %p501_p7 }
 0x11c   : > { %p508_p0 = por %p507_p13, %p506_p12 }
 0x11e   : > { %p509_p1 = pnand %p508_p0, %p502_p9 }
 0x120   : > { %512 = shalt.err (!%p509_p1)
}
 0x121   : > { %426 = dma.vmem_to_hbm [thread:$0]  (%p629_p4), %s682_s18, 128, %s680_s23, %s307_s15  }
 0x122 PF: > { %p432_p2 = scmp.ge.s32.totalorder %s563_s17, 2  ;;  %s333_s9 = sand.u32 1, %s543_s12  }
 0x123   : > { %s334_s10 = scalar_lea.sflag [#allocation5], %s333_s9 }
 0x124   : > { %p429_p3 = pnand %p432_p2, %p636_p8 }
 0x126   : > { %538 = dma.done.wait (!%p429_p3), %s334_s10, 128  }
 0x127   : > { %540 = vsyncadd (!%p429_p3), %s334_s10, 4294967168  ;;  %s16_s17 = sadd.s32 1, %s563_s17   ;;  %s734_s12 = smov %s547_s13 }
 0x128   : > { %p13_p5 = scmp.ge.s32.totalorder %s16_s17, 4   ;;  %s735_s13 = smov %s551_s14 }
 0x129   : > { %s736_s14 = smov %s642_s25  ;;  %s737_s15 = smov %s559_s16 }
 0x12a   : > { %s738_s16 = smov %s740_s20  ;;  %15 = sbr.rel (!%p13_p5) target bundleno = 4 (0x4), region = 67 }
 0x131   :  { %339 = vsyncpa [#allocation5], 1 }
 0x132   :  { %341 = vsyncpa [#allocation5 + $0x1], 1 }

</bundles_post_ra>
